<compile_context>
chip_gen: v6e
topology: v6e:2x2x1
jax: 0.10.0
libtpu: 0.0.40
codegen_flags: <defaults>
</compile_context>

<pallas_src>
import functools

import jax
import jax.numpy as jnp
from jax.experimental import pallas as pl
from jax.experimental.pallas import tpu as pltpu

SWITCH_THRESH = 0.5
_MIB = 1024 * 1024


# --------------------------------------------------------------------------
# Wrapper-side helpers (trace-time Python, no kernel cost)
# --------------------------------------------------------------------------
def _vmem_capacity_bytes():
    """Physical VMEM of the local TPU generation (128 MiB v5e/v6e, 64 MiB v7x)."""
    try:
        cap = getattr(pltpu.get_tpu_info(), "vmem_capacity_bytes", None)
        if cap:
            return int(cap)
    except Exception:
        pass
    return 64 * _MIB  # conservative default (v7x-sized)


def _pick_batch_pack(B, C, itemsize):
    """Smallest Bb dividing B so Bb*C fills the sublane tile (8 f32 / 16 bf16)."""
    sub = {4: 8, 2: 16, 1: 32}.get(int(itemsize), 8)
    if B <= 1 or C % sub == 0:
        return 1
    for bb in range(2, B + 1):
        if B % bb == 0 and (bb * C) % sub == 0:
            return bb
    return 1


def _tri_block(w, C, bb):
    """(Bb*C, Bb*C) block-diagonal tridiagonal matrix for the ECA 3-tap conv.

    Row c of each C x C block: w0*gap[c-1] + w1*gap[c] + w2*gap[c+1] (zero pad),
    i.e. exactly Conv1d(1, 1, k=3, pad=1, bias=False) over the channel axis.
    Precomputed once in the wrapper (depends only on the conv weights) and fed
    to the kernels as a tiny VMEM input -> no per-step iota/select rebuild.
    """
    idx = jnp.arange(C)
    row, col = idx[:, None], idx[None, :]
    tri = (jnp.where(col == row - 1, w[0], 0.0)
           + jnp.where(col == row, w[1], 0.0)
           + jnp.where(col == row + 1, w[2], 0.0)).astype(jnp.float32)
    if bb > 1:
        tri = jnp.kron(jnp.eye(bb, dtype=jnp.float32), tri)
    return tri


def _tile_vmem_bytes(P, lanes, in_isz, out_isz, f32_slabs):
    # 2 inputs double-buffered + output double-buffered + in-kernel f32 temps.
    io = P * lanes * (4 * in_isz + 2 * out_isz)
    work = P * lanes * 4 * f32_slabs
    return io + work


def _pick_hw_tile(HW, P, in_isz, out_isz, f32_slabs, budget, cap=None):
    """Largest 128-multiple tile dividing HW that fits the VMEM budget."""
    upper = HW if cap is None else max(128, min(HW, int(cap)))
    best = 128
    for t in range(128, upper + 1, 128):
        if HW % t == 0 and _tile_vmem_bytes(P, t, in_isz, out_isz, f32_slabs) <= budget:
            best = t
    return best


def _compiler_params(semantics, bytes_estimate, limit_cap):
    limit = int(min(limit_cap, max(32 * _MIB, bytes_estimate + bytes_estimate // 2)))
    return pltpu.CompilerParams(dimension_semantics=semantics,
                                vmem_limit_bytes=limit)


# --------------------------------------------------------------------------
# In-kernel helpers (shared by the fused and tiled paths)
# --------------------------------------------------------------------------
def _eca_gates(tri_ref, gap):
    """sigmoid(block-tridiagonal channel conv) on the (P, 1) GAP column (MXU)."""
    conv = jnp.dot(tri_ref[...], gap, preferred_element_type=jnp.float32)
    return jax.nn.sigmoid(conv)


def _switch_spatial_store(rgb, ir, w_rgb, w_ir, out_ref, *, k_thresh, n_pack, chans):
    """Channel switching + spatial attention on one packed (P, T) f32 slab.

    Elementwise work (switch wheres, add, pairwise max, final gated multiply
    per image) stays on the packed layout; only the per-image C-row reductions
    and the (1, T)-broadcast gate multiply run on C-row segments.
    """
    mask_rgb = w_rgb < k_thresh            # (P, 1) — compare once, then broadcast
    mask_ir = w_ir < k_thresh
    rgb_feats = jnp.where(mask_rgb, ir, rgb)
    ir_feats = jnp.where(mask_ir, rgb, ir)
    both = rgb_feats + ir_feats            # reused for the mean *and* the output
    pair_max = jnp.maximum(rgb_feats, ir_feats)   # one reduce instead of two
    inv_2c = 1.0 / (2.0 * chans)
    for i in range(n_pack):                # static unroll over packed images
        lo = i * chans
        seg = both[lo:lo + chans, :]                              # (C, T)
        cap = jnp.sum(seg, axis=0, keepdims=True) * inv_2c        # mean over 2C
        cmp = jnp.max(pair_max[lo:lo + chans, :], axis=0, keepdims=True)
        # Fold the final /2 into the gate: 0.5*sigmoid(avg)*sigmoid(max).
        gate = (0.5 * jax.nn.sigmoid(cap)) * jax.nn.sigmoid(cmp)  # (1, T)
        out_ref[0, pl.ds(lo, chans), :] = (seg * gate).astype(out_ref.dtype)


# --------------------------------------------------------------------------
# Kernels
# --------------------------------------------------------------------------
def _cssa_fused_kernel(tri_rgb_ref, tri_ir_ref, rgb_ref, ir_ref, out_ref,
                       *, k_thresh, inv_hw, n_pack, chans):
    # Upcast right after the block load; all VPU/EUP math stays f32 (v5e has
    # no bf16 vector paths) while HBM/DMA bytes stay in the native dtype.
    rgb = rgb_ref[0].astype(jnp.float32)                  # (P, HW)
    ir = ir_ref[0].astype(jnp.float32)
    w_rgb = _eca_gates(tri_rgb_ref, jnp.sum(rgb, axis=1, keepdims=True) * inv_hw)
    w_ir = _eca_gates(tri_ir_ref, jnp.sum(ir, axis=1, keepdims=True) * inv_hw)
    _switch_spatial_store(rgb, ir, w_rgb, w_ir, out_ref,
                          k_thresh=k_thresh, n_pack=n_pack, chans=chans)


def _cssa_gate_kernel(tri_rgb_ref, tri_ir_ref, rgb_ref, ir_ref,
                      gr_ref, gi_ref, acc_rgb, acc_ir, *, inv_hw):
    t = pl.program_id(1)

    @pl.when(t == 0)
    def _init():
        acc_rgb[...] = jnp.zeros_like(acc_rgb)
        acc_ir[...] = jnp.zeros_like(acc_ir)

    acc_rgb[...] += jnp.sum(rgb_ref[0].astype(jnp.float32), axis=1, keepdims=True)
    acc_ir[...] += jnp.sum(ir_ref[0].astype(jnp.float32), axis=1, keepdims=True)

    @pl.when(t == pl.num_programs(1) - 1)
    def _finalize():
        gr_ref[0] = _eca_gates(tri_rgb_ref, acc_rgb[...] * inv_hw)
        gi_ref[0] = _eca_gates(tri_ir_ref, acc_ir[...] * inv_hw)


def _cssa_stream_kernel(gr_ref, gi_ref, rgb_ref, ir_ref, out_ref,
                        *, k_thresh, n_pack, chans):
    rgb = rgb_ref[0].astype(jnp.float32)                  # (P, HW_TILE)
    ir = ir_ref[0].astype(jnp.float32)
    _switch_spatial_store(rgb, ir, gr_ref[0], gi_ref[0], out_ref,
                          k_thresh=k_thresh, n_pack=n_pack, chans=chans)


# --------------------------------------------------------------------------
# Wrapper
# --------------------------------------------------------------------------
def cssa_forward(rgb, ir, w_rgb_conv, w_ir_conv,
                 switching_thresh=SWITCH_THRESH,
                 force_tiled=False, max_hw_tile=None):
    """rgb, ir: (B, C, H, W). w_*_conv: Conv1d(1,1,3,bias=False) weights (1,1,3)."""
    assert rgb.shape == ir.shape and rgb.dtype == ir.dtype
    B, C, H, W = rgb.shape
    HW = H * W
    out_dtype = rgb.dtype
    in_isz = jnp.dtype(rgb.dtype).itemsize
    out_isz = in_isz
    k = float(switching_thresh)
    inv_hw = 1.0 / HW

    # Sublane packing: put Bb images on the channel axis so small-C inputs
    # (C = 3/4) fill the 8 (f32) / 16 (bf16) vreg rows instead of padding.
    # The wrapper reshape is a pure row-major metadata change (no HBM copy).
    bb = _pick_batch_pack(B, C, in_isz)
    Bg, P = B // bb, bb * C
    rgb_f = rgb.reshape(Bg, P, HW)
    ir_f = ir.reshape(Bg, P, HW)

    wr = jnp.asarray(w_rgb_conv, jnp.float32).reshape(3)
    wi = jnp.asarray(w_ir_conv, jnp.float32).reshape(3)
    tri_rgb = _tri_block(wr, C, bb)       # hoisted out of the kernel body
    tri_ir = _tri_block(wi, C, bb)

    # Generation-aware VMEM budgets (128 MiB v5e/v6e, 64 MiB v7x).
    vmem_cap = _vmem_capacity_bytes()
    limit_cap = min(int(vmem_cap * 0.85), vmem_cap - 8 * _MIB)
    fused_budget = int(vmem_cap * 0.78)   # fused path = 3N HBM bytes, prefer it
    gate_budget = int(vmem_cap * 0.70)    # pass 1 has no streamed output tile
    stream_budget = int(vmem_cap * 0.55)

    tri_spec1 = pl.BlockSpec((P, P), lambda b: (0, 0))
    fused_bytes = _tile_vmem_bytes(P, HW, in_isz, out_isz, 7)
    use_tiled = force_tiled or fused_bytes > fused_budget

    if not use_tiled:
        # Single pass: one HBM read of each input, full (P, HW) slab per step.
        # TODO(synk): with Bg == 1 on v7x only one TensorCore runs this pass; a
        # 2-way HW split would require the two-pass (gate + stream) structure.
        kernel = functools.partial(_cssa_fused_kernel, k_thresh=k,
                                   inv_hw=inv_hw, n_pack=bb, chans=C)
        out = pl.pallas_call(
            kernel,
            out_shape=jax.ShapeDtypeStruct((Bg, P, HW), out_dtype),
            grid=(Bg,),
            in_specs=[
                tri_spec1, tri_spec1,
                pl.BlockSpec((1, P, HW), lambda b: (b, 0, 0)),
                pl.BlockSpec((1, P, HW), lambda b: (b, 0, 0)),
            ],
            out_specs=pl.BlockSpec((1, P, HW), lambda b: (b, 0, 0)),
            compiler_params=_compiler_params(("parallel",), fused_bytes, limit_cap),
        )(tri_rgb, tri_ir, rgb_f, ir_f)
        return out.reshape(B, C, H, W)

    # ---- Tiled path: ECA gates hoisted out of the streaming sweep ----
    # Zero-pad HW to a multiple of 128 so the tiled path is always selectable
    # and stores stay lane-dense; exact because the GAP divides by the real HW
    # and the pad columns are cropped after the call.
    HW_pad = ((HW + 127) // 128) * 128
    if HW_pad != HW:
        pad = HW_pad - HW
        rgb_f = jnp.pad(rgb_f, ((0, 0), (0, 0), (0, pad)))
        ir_f = jnp.pad(ir_f, ((0, 0), (0, 0), (0, pad)))

    gate_tile = _pick_hw_tile(HW_pad, P, in_isz, 0, 2, gate_budget, max_hw_tile)
    stream_tile = _pick_hw_tile(HW_pad, P, in_isz, out_isz, 7, stream_budget,
                                max_hw_tile)
    n_gate = HW_pad // gate_tile
    n_stream = HW_pad // stream_tile

    # Pass 1: per-channel GAP accumulation over HW tiles + ECA sigmoid gates.
    tri_spec2 = pl.BlockSpec((P, P), lambda b, t: (0, 0))
    gate_bytes = _tile_vmem_bytes(P, gate_tile, in_isz, 0, 2)
    gates_rgb, gates_ir = pl.pallas_call(
        functools.partial(_cssa_gate_kernel, inv_hw=inv_hw),
        out_shape=(jax.ShapeDtypeStruct((Bg, P, 1), jnp.float32),
                   jax.ShapeDtypeStruct((Bg, P, 1), jnp.float32)),
        grid=(Bg, n_gate),
        in_specs=[
            tri_spec2, tri_spec2,
            pl.BlockSpec((1, P, gate_tile), lambda b, t: (b, 0, t)),
            pl.BlockSpec((1, P, gate_tile), lambda b, t: (b, 0, t)),
        ],
        out_specs=(
            pl.BlockSpec((1, P, 1), lambda b, t: (b, 0, 0)),
            pl.BlockSpec((1, P, 1), lambda b, t: (b, 0, 0)),
        ),
        scratch_shapes=[pltpu.VMEM((P, 1), jnp.float32),
                        pltpu.VMEM((P, 1), jnp.float32)],
        compiler_params=_compiler_params(("parallel", "arbitrary"),
                                         gate_bytes, limit_cap),
    )(tri_rgb, tri_ir, rgb_f, ir_f)

    # Pass 2: pure streaming map over (Bg, n_stream) — fully parallel grid,
    # feeds both v7x TensorCores even when Bg == 1.
    stream_bytes = _tile_vmem_bytes(P, stream_tile, in_isz, out_isz, 7)
    out = pl.pallas_call(
        functools.partial(_cssa_stream_kernel, k_thresh=k, n_pack=bb, chans=C),
        out_shape=jax.ShapeDtypeStruct((Bg, P, HW_pad), out_dtype),
        grid=(Bg, n_stream),
        in_specs=[
            pl.BlockSpec((1, P, 1), lambda b, t: (b, 0, 0)),
            pl.BlockSpec((1, P, 1), lambda b, t: (b, 0, 0)),
            pl.BlockSpec((1, P, stream_tile), lambda b, t: (b, 0, t)),
            pl.BlockSpec((1, P, stream_tile), lambda b, t: (b, 0, t)),
        ],
        out_specs=pl.BlockSpec((1, P, stream_tile), lambda b, t: (b, 0, t)),
        compiler_params=_compiler_params(("parallel", "parallel"),
                                         stream_bytes, limit_cap),
    )(gates_rgb, gates_ir, rgb_f, ir_f)

    if HW_pad != HW:
        out = out[:, :, :HW]
    return out.reshape(B, C, H, W)


# --------------------------------------------------------------------------
# Pure-JAX reference mirroring the PyTorch module
# --------------------------------------------------------------------------
def cssa_reference(rgb, ir, wr, wi, k=SWITCH_THRESH):
    def eca(x, w):
        gap = jnp.mean(x, axis=(2, 3))                          # (B, C)
        pad = jnp.pad(gap, ((0, 0), (1, 1)))
        conv = w[0] * pad[:, :-2] + w[1] * pad[:, 1:-1] + w[2] * pad[:, 2:]
        return jax.nn.sigmoid(conv)[:, :, None, None]           # (B, C, 1, 1)

    rgb_w = eca(rgb, wr)
    ir_w = eca(ir, wi)
    rgb_feats = jnp.where(rgb_w < k, ir, rgb)
    ir_feats = jnp.where(ir_w < k, rgb, ir)
    x_cat = jnp.concatenate([rgb_feats, ir_feats], axis=1)
    w_avg = jax.nn.sigmoid(jnp.mean(x_cat, axis=1, keepdims=True))
    w_max = jax.nn.sigmoid(jnp.max(x_cat, axis=1, keepdims=True))
    x_cat_w = x_cat * w_avg * w_max
    C = rgb.shape[1]
    return (x_cat_w[:, :C] + x_cat_w[:, C:]) / 2.0


if __name__ == "__main__":
    key = jax.random.PRNGKey(0)
    k1, k2, k3, k4 = jax.random.split(key, 4)
    B, C, H, W = 2, 4, 16, 16

    rgb = jax.random.normal(k1, (B, C, H, W), jnp.float32)
    ir = jax.random.normal(k2, (B, C, H, W), jnp.float32)
    # Deterministic Conv1d(1, 1, 3, bias=False) weights for the two ECA blocks.
    w_rgb_conv = jax.random.normal(k3, (1, 1, 3), jnp.float32) * 0.5
    w_ir_conv = jax.random.normal(k4, (1, 1, 3), jnp.float32) * 0.5

    ref = cssa_reference(rgb, ir, w_rgb_conv.reshape(3), w_ir_conv.reshape(3))

    # Fused single-pass path (batch-packed: 2 images x 4 channels per block).
    out_fused = jax.block_until_ready(cssa_forward(rgb, ir, w_rgb_conv, w_ir_conv))
    assert out_fused.shape == (B, C, H, W)
    assert jnp.allclose(out_fused, ref, atol=2e-5, rtol=1e-5), "fused path mismatch"

    # Tiled two-pass path: GAP/gate sweep + streaming sweep over 128-lane tiles.
    out_tiled = jax.block_until_ready(
        cssa_forward(rgb, ir, w_rgb_conv, w_ir_conv,
                     force_tiled=True, max_hw_tile=128))
    assert jnp.allclose(out_tiled, ref, atol=2e-5, rtol=1e-5), "tiled path mismatch"

    # Tiled path with HW not a multiple of 128 (exercises the pad/crop fallback)
    # and an unpacked C=3 layout.
    rgb2 = jax.random.normal(k1, (2, 3, 10, 10), jnp.float32)
    ir2 = jax.random.normal(k2, (2, 3, 10, 10), jnp.float32)
    ref2 = cssa_reference(rgb2, ir2, w_rgb_conv.reshape(3), w_ir_conv.reshape(3))
    out2 = jax.block_until_ready(
        cssa_forward(rgb2, ir2, w_rgb_conv, w_ir_conv, force_tiled=True))
    assert jnp.allclose(out2, ref2, atol=2e-5, rtol=1e-5), "padded tiled path mismatch"

    print("KERNEL_OK")
</pallas_src>

<mosaic_0001>
module attributes {stable_mosaic.version = 11 : i64} {
  func.func @_cssa_fused_kernel(%arg0: i32, %arg1: memref<8x8xf32, #tpu.memory_space<vmem>>, %arg2: memref<8x8xf32, #tpu.memory_space<vmem>>, %arg3: memref<1x8x256xf32, #tpu.memory_space<vmem>>, %arg4: memref<1x8x256xf32, #tpu.memory_space<vmem>>, %arg5: memref<1x8x256xf32, #tpu.memory_space<vmem>>) attributes {dimension_semantics = [#tpu.dimension_semantics<parallel>], iteration_bounds = array<i64: 1>, scalar_prefetch = 0 : i64, scratch_operands = 0 : i64, tpu.core_type = #tpu.core_type<tc>, window_params = [{pipeline_mode = #tpu.pipeline_mode<synchronous>, transform_indices = @transform_0, window_bounds = array<i64: 8, 8>}, {pipeline_mode = #tpu.pipeline_mode<synchronous>, transform_indices = @transform_1, window_bounds = array<i64: 8, 8>}, {transform_indices = @transform_2, window_bounds = array<i64: 1, 8, 256>}, {transform_indices = @transform_3, window_bounds = array<i64: 1, 8, 256>}, {transform_indices = @transform_4, window_bounds = array<i64: 1, 8, 256>}]} {
    %c0 = arith.constant 0 : index
    %c0_0 = arith.constant 0 : index
    %c0_1 = arith.constant 0 : index
    %0 = vector.load %arg3[%c0, %c0_0, %c0_1] : memref<1x8x256xf32, #tpu.memory_space<vmem>>, vector<1x8x256xf32>
    %1 = vector.shape_cast %0 : vector<1x8x256xf32> to vector<8x256xf32>
    %c0_2 = arith.constant 0 : index
    %c0_3 = arith.constant 0 : index
    %c0_4 = arith.constant 0 : index
    %2 = vector.load %arg4[%c0_2, %c0_3, %c0_4] : memref<1x8x256xf32, #tpu.memory_space<vmem>>, vector<1x8x256xf32>
    %3 = vector.shape_cast %2 : vector<1x8x256xf32> to vector<8x256xf32>
    %cst = arith.constant dense<0.000000e+00> : vector<8xf32>
    %4 = vector.multi_reduction <add>, %1, %cst [1] : vector<8x256xf32> to vector<8xf32>
    %5 = vector.shape_cast %4 : vector<8xf32> to vector<8x1xf32>
    %cst_5 = arith.constant 3.906250e-03 : f32
    %6 = vector.broadcast %cst_5 : f32 to vector<8x1xf32>
    %7 = arith.mulf %5, %6 : vector<8x1xf32>
    %c0_6 = arith.constant 0 : index
    %c0_7 = arith.constant 0 : index
    %8 = vector.load %arg1[%c0_6, %c0_7] : memref<8x8xf32, #tpu.memory_space<vmem>>, vector<8x8xf32>
    %cst_8 = arith.constant dense<0.000000e+00> : vector<8x1xf32>
    %9 = tpu.matmul %8, %7, %cst_8 {dimension_numbers = #tpu.dot_dimension_numbers<[1], [0], [0], [1], [0, 0, 1, 1], [], []>} : vector<8x8xf32>, vector<8x1xf32>, vector<8x1xf32> -> vector<8x1xf32>
    %10 = arith.negf %9 : vector<8x1xf32>
    %11 = math.exp %10 : vector<8x1xf32>
    %cst_9 = arith.constant 1.000000e+00 : f32
    %12 = vector.broadcast %cst_9 : f32 to vector<8x1xf32>
    %13 = arith.addf %12, %11 : vector<8x1xf32>
    %14 = arith.divf %12, %13 : vector<8x1xf32>
    %cst_10 = arith.constant dense<0.000000e+00> : vector<8xf32>
    %15 = vector.multi_reduction <add>, %3, %cst_10 [1] : vector<8x256xf32> to vector<8xf32>
    %16 = vector.shape_cast %15 : vector<8xf32> to vector<8x1xf32>
    %cst_11 = arith.constant 3.906250e-03 : f32
    %17 = vector.broadcast %cst_11 : f32 to vector<8x1xf32>
    %18 = arith.mulf %16, %17 : vector<8x1xf32>
    %c0_12 = arith.constant 0 : index
    %c0_13 = arith.constant 0 : index
    %19 = vector.load %arg2[%c0_12, %c0_13] : memref<8x8xf32, #tpu.memory_space<vmem>>, vector<8x8xf32>
    %cst_14 = arith.constant dense<0.000000e+00> : vector<8x1xf32>
    %20 = tpu.matmul %19, %18, %cst_14 {dimension_numbers = #tpu.dot_dimension_numbers<[1], [0], [0], [1], [0, 0, 1, 1], [], []>} : vector<8x8xf32>, vector<8x1xf32>, vector<8x1xf32> -> vector<8x1xf32>
    %21 = arith.negf %20 : vector<8x1xf32>
    %22 = math.exp %21 : vector<8x1xf32>
    %cst_15 = arith.constant 1.000000e+00 : f32
    %23 = vector.broadcast %cst_15 : f32 to vector<8x1xf32>
    %24 = arith.addf %23, %22 : vector<8x1xf32>
    %25 = arith.divf %23, %24 : vector<8x1xf32>
    %cst_16 = arith.constant 5.000000e-01 : f32
    %26 = vector.broadcast %cst_16 : f32 to vector<8x1xf32>
    %27 = arith.cmpf olt, %14, %26 : vector<8x1xf32>
    %cst_17 = arith.constant 5.000000e-01 : f32
    %28 = vector.broadcast %cst_17 : f32 to vector<8x1xf32>
    %29 = arith.cmpf olt, %25, %28 : vector<8x1xf32>
    %30 = vector.shape_cast %27 : vector<8x1xi1> to vector<8x1xi1>
    %31 = vector.broadcast %30 : vector<8x1xi1> to vector<8x256xi1>
    %32 = arith.select %31, %3, %1 : vector<8x256xi1>, vector<8x256xf32>
    %33 = vector.shape_cast %29 : vector<8x1xi1> to vector<8x1xi1>
    %34 = vector.broadcast %33 : vector<8x1xi1> to vector<8x256xi1>
    %35 = arith.select %34, %1, %3 : vector<8x256xi1>, vector<8x256xf32>
    %36 = arith.addf %32, %35 : vector<8x256xf32>
    %37 = arith.maximumf %32, %35 : vector<8x256xf32>
    %38 = vector.extract_strided_slice %36 {offsets = [0, 0], sizes = [4, 256], strides = [1, 1]} : vector<8x256xf32> to vector<4x256xf32>
    %cst_18 = arith.constant dense<0.000000e+00> : vector<256xf32>
    %39 = vector.multi_reduction <add>, %38, %cst_18 [0] : vector<4x256xf32> to vector<256xf32>
    %40 = vector.shape_cast %39 : vector<256xf32> to vector<1x256xf32>
    %cst_19 = arith.constant 1.250000e-01 : f32
    %41 = vector.broadcast %cst_19 : f32 to vector<1x256xf32>
    %42 = arith.mulf %40, %41 : vector<1x256xf32>
    %43 = vector.extract_strided_slice %37 {offsets = [0, 0], sizes = [4, 256], strides = [1, 1]} : vector<8x256xf32> to vector<4x256xf32>
    %cst_20 = arith.constant dense<0xFF800000> : vector<256xf32>
    %44 = vector.multi_reduction <maximumf>, %43, %cst_20 [0] : vector<4x256xf32> to vector<256xf32>
    %45 = vector.shape_cast %44 : vector<256xf32> to vector<1x256xf32>
    %46 = arith.negf %42 : vector<1x256xf32>
    %47 = math.exp %46 : vector<1x256xf32>
    %cst_21 = arith.constant 1.000000e+00 : f32
    %48 = vector.broadcast %cst_21 : f32 to vector<1x256xf32>
    %49 = arith.addf %48, %47 : vector<1x256xf32>
    %50 = arith.divf %48, %49 : vector<1x256xf32>
    %cst_22 = arith.constant 5.000000e-01 : f32
    %51 = vector.broadcast %cst_22 : f32 to vector<1x256xf32>
    %52 = arith.mulf %51, %50 : vector<1x256xf32>
    %53 = arith.negf %45 : vector<1x256xf32>
    %54 = math.exp %53 : vector<1x256xf32>
    %cst_23 = arith.constant 1.000000e+00 : f32
    %55 = vector.broadcast %cst_23 : f32 to vector<1x256xf32>
    %56 = arith.addf %55, %54 : vector<1x256xf32>
    %57 = arith.divf %55, %56 : vector<1x256xf32>
    %58 = arith.mulf %52, %57 : vector<1x256xf32>
    %59 = vector.broadcast %58 : vector<1x256xf32> to vector<4x256xf32>
    %60 = arith.mulf %38, %59 : vector<4x256xf32>
    %c0_24 = arith.constant 0 : index
    %c0_25 = arith.constant 0 : index
    %c0_26 = arith.constant 0 : index
    %61 = vector.load %arg5[%c0_24, %c0_25, %c0_26] : memref<1x8x256xf32, #tpu.memory_space<vmem>>, vector<1x4x256xf32>
    %62 = vector.shape_cast %61 : vector<1x4x256xf32> to vector<4x256xf32>
    %63 = vector.shape_cast %60 : vector<4x256xf32> to vector<1x4x256xf32>
    tpu.vector_store %arg5[%c0_24, %c0_25, %c0_26], %63 {strides = array<i32>} : memref<1x8x256xf32, #tpu.memory_space<vmem>>, vector<1x4x256xf32>,
    %64 = vector.extract_strided_slice %36 {offsets = [4, 0], sizes = [4, 256], strides = [1, 1]} : vector<8x256xf32> to vector<4x256xf32>
    %cst_27 = arith.constant dense<0.000000e+00> : vector<256xf32>
    %65 = vector.multi_reduction <add>, %64, %cst_27 [0] : vector<4x256xf32> to vector<256xf32>
    %66 = vector.shape_cast %65 : vector<256xf32> to vector<1x256xf32>
    %cst_28 = arith.constant 1.250000e-01 : f32
    %67 = vector.broadcast %cst_28 : f32 to vector<1x256xf32>
    %68 = arith.mulf %66, %67 : vector<1x256xf32>
    %69 = vector.extract_strided_slice %37 {offsets = [4, 0], sizes = [4, 256], strides = [1, 1]} : vector<8x256xf32> to vector<4x256xf32>
    %cst_29 = arith.constant dense<0xFF800000> : vector<256xf32>
    %70 = vector.multi_reduction <maximumf>, %69, %cst_29 [0] : vector<4x256xf32> to vector<256xf32>
    %71 = vector.shape_cast %70 : vector<256xf32> to vector<1x256xf32>
    %72 = arith.negf %68 : vector<1x256xf32>
    %73 = math.exp %72 : vector<1x256xf32>
    %cst_30 = arith.constant 1.000000e+00 : f32
    %74 = vector.broadcast %cst_30 : f32 to vector<1x256xf32>
    %75 = arith.addf %74, %73 : vector<1x256xf32>
    %76 = arith.divf %74, %75 : vector<1x256xf32>
    %cst_31 = arith.constant 5.000000e-01 : f32
    %77 = vector.broadcast %cst_31 : f32 to vector<1x256xf32>
    %78 = arith.mulf %77, %76 : vector<1x256xf32>
    %79 = arith.negf %71 : vector<1x256xf32>
    %80 = math.exp %79 : vector<1x256xf32>
    %cst_32 = arith.constant 1.000000e+00 : f32
    %81 = vector.broadcast %cst_32 : f32 to vector<1x256xf32>
    %82 = arith.addf %81, %80 : vector<1x256xf32>
    %83 = arith.divf %81, %82 : vector<1x256xf32>
    %84 = arith.mulf %78, %83 : vector<1x256xf32>
    %85 = vector.broadcast %84 : vector<1x256xf32> to vector<4x256xf32>
    %86 = arith.mulf %64, %85 : vector<4x256xf32>
    %c0_33 = arith.constant 0 : index
    %c4 = arith.constant 4 : index
    %c0_34 = arith.constant 0 : index
    %87 = vector.load %arg5[%c0_33, %c4, %c0_34] : memref<1x8x256xf32, #tpu.memory_space<vmem>>, vector<1x4x256xf32>
    %88 = vector.shape_cast %87 : vector<1x4x256xf32> to vector<4x256xf32>
    %89 = vector.shape_cast %86 : vector<4x256xf32> to vector<1x4x256xf32>
    tpu.vector_store %arg5[%c0_33, %c4, %c0_34], %89 {strides = array<i32>} : memref<1x8x256xf32, #tpu.memory_space<vmem>>, vector<1x4x256xf32>,
    return
  }
  func.func @transform_0(%arg0: i32) -> (i32, i32) {
    %c0_i32 = arith.constant 0 : i32
    %c0_i32_0 = arith.constant 0 : i32
    %c0_i32_1 = arith.constant 0 : i32
    return %c0_i32, %c0_i32_0 : i32, i32
  }
  func.func @transform_1(%arg0: i32) -> (i32, i32) {
    %c0_i32 = arith.constant 0 : i32
    %c0_i32_0 = arith.constant 0 : i32
    %c0_i32_1 = arith.constant 0 : i32
    return %c0_i32, %c0_i32_0 : i32, i32
  }
  func.func @transform_2(%arg0: i32) -> (i32, i32, i32) {
    %c0_i32 = arith.constant 0 : i32
    %c0_i32_0 = arith.constant 0 : i32
    %c0_i32_1 = arith.constant 0 : i32
    return %arg0, %c0_i32, %c0_i32_0 : i32, i32, i32
  }
  func.func @transform_3(%arg0: i32) -> (i32, i32, i32) {
    %c0_i32 = arith.constant 0 : i32
    %c0_i32_0 = arith.constant 0 : i32
    %c0_i32_1 = arith.constant 0 : i32
    return %arg0, %c0_i32, %c0_i32_0 : i32, i32, i32
  }
  func.func @transform_4(%arg0: i32) -> (i32, i32, i32) {
    %c0_i32 = arith.constant 0 : i32
    %c0_i32_0 = arith.constant 0 : i32
    %c0_i32_1 = arith.constant 0 : i32
    return %arg0, %c0_i32, %c0_i32_0 : i32, i32, i32
  }
}

</mosaic_0001>

<bundles_post_ra>
// kernel: tpu_custom_call.1
= control target key start
LH: loop header
LB: loop body
LE: loop exit
PB: predicated region body
PF: predicated region fallthrough
CT: control target
= control target key end

     0   :  { %9 = vsyncpa [#allocation3], 0  ;;  %s657_s0 = inlined_call_operand.hbm [shape: f32[8,8], index: 0, kind: input, shape index: {}]   ;;  %s658_s1 = inlined_call_operand.hbm [shape: f32[8,8], index: 1, kind: input, shape index: {}]   ;;  %s659_s2 = inlined_call_operand.hbm [shape: f32[1,8,256], index: 2, kind: input, shape index: {}]   ;;  %s660_s3 = inlined_call_operand.hbm [shape: f32[1,8,256], index: 3, kind: input, shape index: {}]   ;;  %s661_s4 = inlined_call_operand.hbm [shape: f32[1,8,256], index: 4, kind: output, shape index: {}]  }
   0x1   :  { %10 = vsyncpa [#allocation6], 0 }
   0x2   :  { %11 = vsyncpa [#allocation9], 0 }
   0x3   :  { %12 = vsyncpa [#allocation4], 0  ;;  %s591_s15 = smov [#allocation5]   ;;  %s592_s17 = smov [#allocation2]  }
   0x4   :  { %s29_s16 = sshll.u32 %s591_s15, 4  ;;  %s19_s18 = sshll.u32 %s592_s17, 4  ;;  %s30_s16 = int_to_ptr.vmem [resolvable:$true] %s29_s16  ;;  %s20_s18 = int_to_ptr.vmem [resolvable:$true] %s19_s18 }
   0x5   :  { %s491_s19 = scalar_lea.vmem %s30_s16, 128  ;;  %p496_p1 = scmp.lt.s32.totalorder %s30_s16, %s30_s16 }
   0x6   :  { %p492_p0 = scmp.ne.s32.totalorder %s30_s16, %s491_s19  ;;  %p497_p2 = scmp.lt.s32.totalorder %s491_s19, %s491_s19 }
   0x8   :  { %p498_p3 = por %p497_p2, %p496_p1 }
   0xa   :  { %p499_p4 = pnand %p498_p3, %p492_p0 }
   0xc   :  { %502 = shalt.err (!%p499_p4)
}
   0xd   :  { %32 = dma.hbm_to_vmem [thread:$0]  %s658_s1, 128, %s30_s16, [#allocation6]  }
   0xe   :  { %s511_s22 = scalar_lea.vmem %s20_s18, 128  ;;  %p516_p6 = scmp.lt.s32.totalorder %s20_s18, %s20_s18 }
   0xf   :  { %p512_p5 = scmp.ne.s32.totalorder %s20_s18, %s511_s22  ;;  %p517_p7 = scmp.lt.s32.totalorder %s511_s22, %s511_s22 }
  0x11   :  { %p518_p8 = por %p517_p7, %p516_p6 }
  0x13   :  { %p519_p9 = pnand %p518_p8, %p512_p5 }
  0x15   :  { %522 = shalt.err (!%p519_p9)
}
  0x16   :  { %22 = dma.hbm_to_vmem [thread:$0]  %s657_s0, 128, %s20_s18, [#allocation3]  }
  0x17   :  { %s593_s25 = smov [#allocation7]   ;;  %s594_s27 = smov [#allocation8]  }
  0x18   :  { %s39_s26 = sshll.u32 %s593_s25, 4  ;;  %s49_s28 = sshll.u32 %s594_s27, 4  ;;  %s40_s26 = int_to_ptr.vmem [resolvable:$true] %s39_s26  ;;  %s50_s28 = int_to_ptr.vmem [resolvable:$true] %s49_s28 }
  0x19   :  { %s531_s29 = scalar_lea.vmem %s40_s26, 256  ;;  %p536_p11 = scmp.lt.s32.totalorder %s40_s26, %s40_s26 }
  0x1a   :  { %p532_p10 = scmp.ne.s32.totalorder %s40_s26, %s531_s29  ;;  %p537_p12 = scmp.lt.s32.totalorder %s531_s29, %s531_s29 }
  0x1c   :  { %p538_p13 = por %p537_p12, %p536_p11 }
  0x1e   :  { %p539_p0 = pnand %p538_p13, %p532_p10 }
  0x20   :  { %542 = shalt.err (!%p539_p0)
}
  0x21   :  { %42 = dma.hbm_to_vmem [thread:$0]  %s659_s2, 256, %s40_s26, [#allocation6]  }
  0x22   :  { %s551_s5 = scalar_lea.vmem %s50_s28, 256  ;;  %p556_p2 = scmp.lt.s32.totalorder %s50_s28, %s50_s28 }
  0x23   :  { %p552_p1 = scmp.ne.s32.totalorder %s50_s28, %s551_s5  ;;  %p557_p3 = scmp.lt.s32.totalorder %s551_s5, %s551_s5 }
  0x25   :  { %p558_p4 = por %p557_p3, %p556_p2 }
  0x27   :  { %p559_p5 = pnand %p558_p4, %p552_p1 }
  0x29   :  { %562 = shalt.err (!%p559_p5)
}
  0x2a   :  { %52 = dma.hbm_to_vmem [thread:$0]  %s660_s3, 256, %s50_s28, [#allocation9]  }
  0x2b   :  { %583 = dma.done.wait [#allocation3], 128  }
  0x2c   :  { %584 = vsyncadd [#allocation3], 4294967168 }
  0x2d   :  { %585 = dma.done.wait [#allocation6], 384  }
  0x2e   :  { %586 = vsyncadd [#allocation6], 4294966912 }
  0x2f   :  { %587 = dma.done.wait [#allocation9], 256  }
  0x30   :  { %588 = vsyncadd [#allocation9], 4294967040  ;;  %v65_v0 = vld [vmem:[#allocation7] sm:$0xff]  ;;  %v66_v1 = vld [vmem:[#allocation7 + $0x8] sm:$0xff]  ;;  %v595_v6 = vmov 0.0   ;;  %vm596_vm0 = vmmov 0  }
  0x31   :  { %v67_v2 = vld [vmem:[#allocation8] sm:$0xff]  ;;  %v69_v3 = vadd.f32 %v66_v1, %v65_v0  ;;  %v68_v4 = vld [vmem:[#allocation8 + $0x8] sm:$0xff]  ;;  %423 = vmatprep.subr.mxu0 %v595_v6  ;;  %428 = vmatprep.subr.mxu1 %v595_v6  ;;  %vm74_vm1 = vcmask 64512   ;;  %v597_v13 = vmov 0   ;;  %vm258_vm5 = vcmask 1043456   ;;  %s598_s2 = smov [#allocation10]  }
  0x32   :  { %v154_v5 = vadd.f32 %v68_v4, %v67_v2  ;;  %425 = vmatprep.mubr.msk.f32.mxu0 %vm596_vm0, %v595_v6  ;;  %430 = vmatprep.mubr.msk.f32.mxu1 %vm596_vm0, %v595_v6  ;;  %v73_v9 = vld [vmem:[#allocation2] sm:$0xff]  ;;  %v158_v12 = vld [vmem:[#allocation5] sm:$0xff]  ;;  %vm343_vm7 = vcmask 1047556   ;;  %s396_s3 = sshll.u32 %s598_s2, 4  ;;  %s397_s3 = int_to_ptr.vmem [resolvable:$true] %s396_s3 }
  0x33   :  { %70 = vadd.xlane.f32.xlu0 %v69_v3  ;;  %441 = vset.pattern.permute.xlu1 %v597_v13  ;;  %s563_s7 = scalar_lea.vmem %s397_s3, 256  ;;  %p568_p7 = scmp.lt.s32.totalorder %s397_s3, %s397_s3 }
  0x34   :  { %442 = vset.pattern.permute.xlu0 %v597_v13  ;;  %p564_p6 = scmp.ne.s32.totalorder %s397_s3, %s563_s7  ;;  %p569_p8 = scmp.lt.s32.totalorder %s563_s7, %s563_s7 }
  0x36   :  { %p570_p9 = por %p569_p8, %p568_p7 }
  0x37   :  { %155 = vadd.xlane.f32.xlu0 %v154_v5 }
  0x38   :  { %p571_p10 = pnand %p570_p9, %p564_p6 }
  0xbc   :  { %v71_v7 = vpop.xlane.xlu0 %70 }
  0xbd   :  { %v72_v8 = vmul.f32 0.00390625, %v71_v7 }
  0xbf   :  { %424 = vmatpush3.msra.mxu0 %v72_v8 }
  0xc0   :  { %426 = vmatmul.mubr.msk.f32.vlgmr.msra.gmra.mxu0 %vm74_vm1, %v73_v9  ;;  %v156_v10 = vpop.xlane.xlu0 %155 }
  0xc1   :  { %v157_v11 = vmul.f32 0.00390625, %v156_v10 }
  0xc3   :  { %429 = vmatpush3.msra.mxu1 %v157_v11 }
  0xc4   :  { %431 = vmatmul.mubr.msk.f32.vlgmr.msra.gmra.mxu1 %vm74_vm1, %v158_v12 }
 0x180   :  { %v144_v14 = vpop.f32.mrf.mxu0 }
 0x181   :  { %v408_v15 = vmul.f32 -1.442695, %v144_v14 }
 0x182   :  { %v427_v16 = vpop.f32.mrf.mxu0 }
 0x183   :  { %443 = vpow2.f32 %v408_v15 }
 0x184   :  { %v228_v17 = vpop.f32.mrf.mxu1 }
 0x185   :  { %v410_v18 = vmul.f32 -1.442695, %v228_v17 }
 0x186   :  { %v432_v19 = vpop.f32.mrf.mxu1 }
 0x187   :  { %445 = vpow2.f32 %v410_v18 }
 0x190   :  { %v444_v20 = vpop.eup %443 }
 0x191   :  { %v151_v21 = vadd.f32 1.0, %v444_v20 }
 0x193   :  { %447 = vrcp.f32 %v151_v21 }
 0x194   :  { %v446_v22 = vpop.eup %445 }
 0x195   :  { %v235_v23 = vadd.f32 1.0, %v446_v22 }
 0x197   :  { %449 = vrcp.f32 %v235_v23 }
 0x1a0   :  { %v448_v24 = vpop.eup %447 }
 0x1a1   :  { %vm238_vm2 = vcmp.lt.f32.partialorder %v448_v24, 0.5 }
 0x1a2   :  { %v240_v25 = vsel %vm238_vm2, 1, %v597_v13 }
 0x1a3   :  { %242 = vperm.xlu1 %441, %v240_v25  }
 0x1a4   :  { %v450_v26 = vpop.eup %449 }
 0x1a5   :  { %vm239_vm3 = vcmp.lt.f32.partialorder %v450_v26, 0.5 }
 0x1a6   :  { %v247_v27 = vsel %vm239_vm3, 1, %v597_v13 }
 0x1a7   :  { %249 = vperm.xlu1 %441, %v247_v27  }
 0x21e   :  { %v243_v28 = vpop.permute.xlu1 %242 }
 0x21f   :  { %vm244_vm4 = vcmp.eq.s32.totalorder %v243_v28, 1 }
 0x220   :  { %v245_v30 = vsel %vm244_vm4, %v67_v2, %v65_v0  ;;  %v246_v31 = vsel %vm244_vm4, %v68_v4, %v66_v1 }
 0x222   :  { %v250_v29 = vpop.permute.xlu1 %249 }
 0x223   :  { %vm251_vm6 = vcmp.eq.s32.totalorder %v250_v29, 1 }
 0x224   :  { %v252_v32 = vsel %vm251_vm6, %v65_v0, %v67_v2  ;;  %v253_v33 = vsel %vm251_vm6, %v66_v1, %v68_v4 }
 0x225   :  { %v636_v34 = vadd.f32 %v252_v32, %v245_v30  ;;  %v638_v35 = vadd.f32 %v253_v33, %v246_v31  ;;  %v256_v36 = vmax.f32 %v245_v30, %v252_v32  ;;  %v257_v37 = vmax.f32 %v246_v31, %v253_v33 }
 0x227   :  { %v259_v38 = vsel %vm258_vm5, %v636_v34, 0.0  ;;  %v266_v39 = vsel %vm258_vm5, %v638_v35, 0.0  ;;  %v275_v40 = vsel %vm258_vm5, %v256_v36, -inf  ;;  %v282_v41 = vsel %vm258_vm5, %v257_v37, -inf }
 0x228   :  { %v260_v42 = vrot.slane %v259_v38, 4  ;;  %v267_v43 = vrot.slane %v266_v39, 4  ;;  %v276_v44 = vrot.slane %v275_v40, 4  ;;  %v283_v45 = vrot.slane %v282_v41, 4 }
 0x229   :  { %v323_v46 = vrot.slane %v636_v34, 4  ;;  %v324_v47 = vrot.slane %v638_v35, 4  ;;  %v344_v48 = vsel %vm343_vm7, %v256_v36, -inf  ;;  %v351_v49 = vsel %vm343_vm7, %v257_v37, -inf }
 0x22a   :  { %v261_v50 = vadd.f32 %v260_v42, %v259_v38  ;;  %v268_v51 = vadd.f32 %v267_v43, %v266_v39  ;;  %v277_v52 = vmax.f32 %v275_v40, %v276_v44  ;;  %v284_v53 = vmax.f32 %v282_v41, %v283_v45 }
 0x22b   :  { %v327_v54 = vsel %vm258_vm5, %v323_v46, 0.0  ;;  %v334_v55 = vsel %vm258_vm5, %v324_v47, 0.0  ;;  %v345_v56 = vrot.slane %v344_v48, 4  ;;  %v352_v57 = vrot.slane %v351_v49, 4 }
 0x22c   :  { %v262_v58 = vrot.slane %v261_v50, 2  ;;  %v269_v59 = vrot.slane %v268_v51, 2  ;;  %v278_v60 = vrot.slane %v277_v52, 2  ;;  %v285_v61 = vrot.slane %v284_v53, 2 }
 0x22d   :  { %v328_v62 = vrot.slane %v327_v54, 4  ;;  %v335_v63 = vrot.slane %v334_v55, 4  ;;  %v346_v0 = vmax.f32 %v344_v48, %v345_v56  ;;  %v353_v1 = vmax.f32 %v351_v49, %v352_v57 }
 0x22e   :  { %v263_v2 = vadd.f32 %v262_v58, %v261_v50  ;;  %v270_v3 = vadd.f32 %v269_v59, %v268_v51  ;;  %v279_v4 = vmax.f32 %v277_v52, %v278_v60  ;;  %v286_v5 = vmax.f32 %v284_v53, %v285_v61 }
 0x22f   :  { %v329_v6 = vadd.f32 %v328_v62, %v327_v54  ;;  %v336_v7 = vadd.f32 %v335_v63, %v334_v55  ;;  %v347_v8 = vrot.slane %v346_v0, 2  ;;  %v354_v9 = vrot.slane %v353_v1, 2 }
 0x230   :  { %v264_v10 = vrot.slane %v263_v2, 1  ;;  %v271_v11 = vrot.slane %v270_v3, 1  ;;  %v280_v12 = vrot.slane %v279_v4, 1  ;;  %v287_v13 = vrot.slane %v286_v5, 1 }
 0x231   :  { %v330_v14 = vrot.slane %v329_v6, 2  ;;  %v337_v15 = vrot.slane %v336_v7, 2  ;;  %v348_v16 = vmax.f32 %v346_v0, %v347_v8  ;;  %v355_v17 = vmax.f32 %v353_v1, %v354_v9 }
 0x232   :  { %v265_v18 = vadd.f32 %v264_v10, %v263_v2  ;;  %v272_v19 = vadd.f32 %v271_v11, %v270_v3  ;;  %v281_v20 = vmax.f32 %v279_v4, %v280_v12  ;;  %v288_v21 = vmax.f32 %v286_v5, %v287_v13 }
 0x233   :  { %v331_v22 = vadd.f32 %v330_v14, %v329_v6  ;;  %v338_v23 = vadd.f32 %v337_v15, %v336_v7  ;;  %v349_v24 = vrot.slane %v348_v16, 1  ;;  %v356_v25 = vrot.slane %v355_v17, 1 }
 0x234   :  { %v411_v26 = vmul.f32 -0.125, %v265_v18  ;;  %v412_v27 = vmul.f32 -0.125, %v272_v19  ;;  %v413_v28 = vmul.f32 -1.442695, %v281_v20  ;;  %v414_v29 = vmul.f32 -1.442695, %v288_v21 }
 0x235   :  { %v332_v30 = vrot.slane %v331_v22, 1  ;;  %v339_v31 = vrot.slane %v338_v23, 1  ;;  %v350_v32 = vmax.f32 %v348_v16, %v349_v24  ;;  %v357_v33 = vmax.f32 %v355_v17, %v356_v25 }
 0x236   :  { %v291_v36 = vmul.f32 1.442695, %v411_v26  ;;  %v293_v37 = vmul.f32 1.442695, %v412_v27  ;;  %451 = vpow2.f32 %v413_v28 }
 0x237   :  { %453 = vpow2.f32 %v414_v29  ;;  %v333_v38 = vadd.f32 %v332_v30, %v331_v22  ;;  %v340_v39 = vadd.f32 %v339_v31, %v338_v23  ;;  %v417_v40 = vmul.f32 -1.442695, %v350_v32 }
 0x238   :  { %455 = vpow2.f32 %v291_v36  ;;  %v418_v41 = vmul.f32 -1.442695, %v357_v33 }
 0x239   :  { %457 = vpow2.f32 %v293_v37  ;;  %v415_v42 = vmul.f32 -0.125, %v333_v38  ;;  %v416_v43 = vmul.f32 -0.125, %v340_v39 }
 0x23a   :  { %459 = vpow2.f32 %v417_v40 }
 0x23b   :  { %v360_v44 = vmul.f32 1.442695, %v415_v42  ;;  %v362_v45 = vmul.f32 1.442695, %v416_v43  ;;  %461 = vpow2.f32 %v418_v41 }
 0x23d   :  { %463 = vpow2.f32 %v360_v44 }
 0x23e   :  { %465 = vpow2.f32 %v362_v45 }
 0x243   :  { %v452_v46 = vpop.eup %451 }
 0x244   :  { %v454_v47 = vpop.eup %453  ;;  %v309_v50 = vadd.f32 1.0, %v452_v46 }
 0x245   :  { %v456_v48 = vpop.eup %455  ;;  %v310_v52 = vadd.f32 1.0, %v454_v47 }
 0x246   :  { %v458_v49 = vpop.eup %457  ;;  %v295_v51 = vadd.f32 1.0, %v456_v48 }
 0x247   :  { %v296_v53 = vadd.f32 1.0, %v458_v49  ;;  %v460_v54 = vpop.eup %459 }
 0x248   :  { %467 = vrcp.f32 %v295_v51  ;;  %v462_v55 = vpop.eup %461  ;;  %v378_v58 = vadd.f32 1.0, %v460_v54 }
 0x249   :  { %469 = vrcp.f32 %v296_v53  ;;  %v379_v60 = vadd.f32 1.0, %v462_v55 }
 0x24a   :  { %v464_v56 = vpop.eup %463  ;;  %471 = vrcp.f32 %v309_v50 }
 0x24b   :  { %v466_v57 = vpop.eup %465  ;;  %473 = vrcp.f32 %v310_v52  ;;  %v364_v59 = vadd.f32 1.0, %v464_v56 }
 0x24c   :  { %v365_v61 = vadd.f32 1.0, %v466_v57 }
 0x24d   :  { %475 = vrcp.f32 %v364_v59 }
 0x24e   :  { %477 = vrcp.f32 %v365_v61 }
 0x24f   :  { %479 = vrcp.f32 %v378_v58 }
 0x250   :  { %481 = vrcp.f32 %v379_v60 }
 0x255   :  { %v468_v62 = vpop.eup %467 }
 0x256   :  { %v470_v63 = vpop.eup %469  ;;  %v301_v0 = vmul.f32 0.5, %v468_v62 }
 0x257   :  { %v472_v1 = vpop.eup %471  ;;  %v302_v2 = vmul.f32 0.5, %v470_v63 }
 0x258   :  { %v474_v3 = vpop.eup %473  ;;  %v315_v4 = vmul.f32 %v472_v1, %v301_v0 }
 0x259   :  { %v316_v5 = vmul.f32 %v474_v3, %v302_v2 }
 0x25a   :  { %v476_v6 = vpop.eup %475  ;;  %v317_v7 = vmul.f32 %v315_v4, %v636_v34 }
 0x25b   :  { %v478_v8 = vpop.eup %477  ;;  %v318_v9 = vmul.f32 %v316_v5, %v638_v35  ;;  %v370_v10 = vmul.f32 0.5, %v476_v6 }
 0x25c   :  { %v480_v11 = vpop.eup %479  ;;  %319 = vst [vmem:[#allocation10] sm:$0xf] %v317_v7  ;;  %v371_v12 = vmul.f32 0.5, %v478_v8 }
 0x25d   :  { %v482_v13 = vpop.eup %481  ;;  %320 = vst [vmem:[#allocation10 + $0x8] sm:$0xf] %v318_v9  ;;  %v384_v14 = vmul.f32 %v480_v11, %v370_v10 }
 0x25e   :  { %v385_v15 = vmul.f32 %v482_v13, %v371_v12 }
 0x25f   :  { %v386_v16 = vmul.f32 %v384_v14, %v636_v34 }
 0x260   :  { %v387_v17 = vmul.f32 %v385_v15, %v638_v35 }
 0x261   :  { %388 = vst [vmem:[#allocation10] sm:$0xf0] %v386_v16 }
 0x262   :  { %389 = vst [vmem:[#allocation10 + $0x8] sm:$0xf0] %v387_v17 }
 0x263   :  { %574 = shalt.err (!%p571_p10)
}
 0x264   :  { %399 = dma.vmem_to_hbm [thread:$0]  %s397_s3, 256, %s661_s4, [#allocation4]  }
 0x265   :  { %589 = dma.done.wait [#allocation4], 256  }
 0x266   :  { %590 = vsyncadd [#allocation4], 4294967040 }
 0x267   :  { %403 = vsyncpa [#allocation3], 1 }
 0x268   :  { %404 = vsyncpa [#allocation6], 1 }
 0x269   :  { %405 = vsyncpa [#allocation9], 1 }
 0x26a   :  { %406 = vsyncpa [#allocation4], 1 }

</bundles_post_ra>
